<compile_context>
chip_gen: v6e
topology: v6e:2x2x1
jax: 0.10.0
libtpu: 0.0.40
codegen_flags: <defaults>
</compile_context>

<pallas_src>
import functools

import jax
import jax.numpy as jnp
from jax.experimental import pallas as pl
from jax.experimental.pallas import tpu as pltpu

_NUM_CORES = 2  # leading "parallel" axis: TensorCore split on v7x, harmless on 1-TC chips


def _hloss_kernel(x_ref, o_ref, *, total_rows: int, tile_b: int,
                  blocks_per_core: int, needs_mask: bool):
    c = pl.program_id(0)   # "parallel" axis: per-TensorCore partition
    i = pl.program_id(1)   # "arbitrary" axis: reduction over row blocks of this core

    # Per-core output block stays resident across the arbitrary axis -> init at i == 0.
    @pl.when(i == 0)
    def _init():
        o_ref[...] = jnp.zeros_like(o_ref)

    x = x_ref[...].astype(jnp.float32)            # (TB, C)
    m = jnp.max(x, axis=1, keepdims=True)         # (TB, 1) stable-softmax shift (XLU)
    s = x - m
    e = jnp.exp(s)                                # only per-element transcendental (EUP)

    # Lane-axis reductions on the XLU; 1-D (TB,) results are lane-dense.
    denom = jnp.sum(e, axis=1)                    # (TB,)  sum_c exp(s)
    sum_es = jnp.sum(e * s, axis=1)               # (TB,)  sum_c exp(s)*s

    # -sum_c softmax * log_softmax  ==  log(denom) - sum(e*s)/denom   (per row)
    row_ent = jnp.log(denom) - sum_es / denom     # (TB,)

    if needs_mask:
        # Only emitted when the wrapper actually padded the batch.
        row_ids = ((c * blocks_per_core + i) * tile_b
                   + jax.lax.broadcasted_iota(jnp.int32, (1, tile_b), 1))
        row_ent = jnp.where(row_ids < total_rows, row_ent.reshape(1, tile_b), 0.0)

    # Fold this block to a scalar and accumulate into the resident per-core output row.
    o_ref[...] += jnp.sum(row_ent)


def hloss(x: jax.Array, *, tile_b: int | None = None,
          target_block_bytes: int | None = None) -> jax.Array:
    """Entropy loss: -sum(softmax(x, 1) * log_softmax(x, 1)). Returns a scalar f32."""
    B, C = x.shape
    itemsize = x.dtype.itemsize
    row_bytes = C * itemsize

    # Per-TensorCore VMEM capacity (128 MiB v5e/v6e, 64 MiB v7x).
    try:
        vmem_cap = int(pltpu.get_tpu_info().vmem_capacity_bytes)
    except Exception:
        vmem_cap = 64 * 1024 * 1024
    usable = vmem_cap * 3 // 4   # leave headroom for compiler scratch

    # Live VMEM footprint per block row: 2x double-buffered input + ~5 f32 elementwise
    # temporaries (x_f32, s, e, e*s + slack) that can coexist inside the kernel.
    footprint_per_row = C * (2 * itemsize + 5 * 4)

    if tile_b is None:
        if target_block_bytes is None:
            target_block_bytes = 16 * 1024 * 1024   # amortize ~0.35us per-step overhead
        rows_by_target = target_block_bytes // max(row_bytes, 1)
        rows_by_vmem = usable // max(footprint_per_row, 1)
        padded_batch_rows = ((B + 7) // 8) * 8
        tile_b = min(rows_by_target, rows_by_vmem, padded_batch_rows)
        tile_b = max(8, (tile_b // 8) * 8)
    assert tile_b % 8 == 0, "tile_b must be a multiple of 8 (sublane granularity)"

    # Split row blocks across the (up to) two TensorCores; pad so the grid exactly divides.
    num_blocks = pl.cdiv(B, tile_b)
    blocks_per_core = pl.cdiv(num_blocks, _NUM_CORES)
    padded_B = _NUM_CORES * blocks_per_core * tile_b
    needs_mask = padded_B != B
    if needs_mask:
        x = jnp.pad(x, ((0, padded_B - B), (0, 0)))

    live_bytes = tile_b * footprint_per_row + (1 << 20)
    vmem_limit = int(min(vmem_cap * 7 // 8, max(16 * 1024 * 1024, live_bytes)))

    out = pl.pallas_call(
        functools.partial(_hloss_kernel, total_rows=B, tile_b=tile_b,
                          blocks_per_core=blocks_per_core, needs_mask=needs_mask),
        # One lane-dense (1, 128) partial row per core; summed in the wrapper.
        out_shape=jax.ShapeDtypeStruct((_NUM_CORES, 1, 128), jnp.float32),
        grid_spec=pltpu.PrefetchScalarGridSpec(
            num_scalar_prefetch=0,
            grid=(_NUM_CORES, blocks_per_core),
            in_specs=[pl.BlockSpec((tile_b, C),
                                   lambda c, i: (c * blocks_per_core + i, 0))],
            out_specs=pl.BlockSpec((1, 1, 128), lambda c, i: (c, 0, 0)),
        ),
        compiler_params=pltpu.CompilerParams(
            dimension_semantics=("parallel", "arbitrary"),
            vmem_limit_bytes=vmem_limit,
        ),
        cost_estimate=pl.CostEstimate(
            flops=6 * padded_B * C,
            transcendentals=padded_B * C + 2 * padded_B,
            bytes_accessed=padded_B * C * itemsize + _NUM_CORES * 128 * 4,
        ),
    )(x)
    return jnp.sum(out[:, 0, 0])


def hloss_ref(x: jax.Array) -> jax.Array:
    prob = jax.nn.softmax(x, axis=1)
    log_prob = jax.nn.log_softmax(x, axis=1)
    return -jnp.sum(prob * log_prob)


if __name__ == "__main__":
    key = jax.random.PRNGKey(0)
    # small logits tensor: batch=16, classes=32 (softmax over dim=1)
    x = jax.random.normal(key, (16, 32), dtype=jnp.float32) * 3.0

    out = jax.block_until_ready(hloss(x))
    ref = hloss_ref(x)
    assert jnp.allclose(out, ref, rtol=1e-5, atol=1e-5), (out, ref)

    # ragged batch: exercises padding + mask path and multi-step per-core accumulation
    x2 = jax.random.normal(jax.random.PRNGKey(1), (50, 32), dtype=jnp.float32)
    out2 = jax.block_until_ready(hloss(x2, tile_b=16))
    ref2 = hloss_ref(x2)
    assert jnp.allclose(out2, ref2, rtol=1e-5, atol=1e-5), (out2, ref2)

    print("KERNEL_OK")
</pallas_src>

<mosaic_0001>
module attributes {stable_mosaic.version = 11 : i64} {
  func.func @_hloss_kernel(%arg0: i32, %arg1: i32, %arg2: memref<16x32xf32, #tpu.memory_space<vmem>>, %arg3: memref<1x1x128xf32, #tpu.memory_space<vmem>>) attributes {dimension_semantics = [#tpu.dimension_semantics<parallel>, #tpu.dimension_semantics<arbitrary>], iteration_bounds = array<i64: 2, 1>, scalar_prefetch = 0 : i64, scratch_operands = 0 : i64, tpu.core_type = #tpu.core_type<tc>, window_params = [{transform_indices = @transform_0, window_bounds = array<i64: 16, 32>}, {transform_indices = @transform_1, window_bounds = array<i64: 1, 1, 128>}]} {
    %c0_i32 = arith.constant 0 : i32
    %0 = arith.cmpi eq, %arg1, %c0_i32 : i32
    %1 = arith.extui %0 : i1 to i32
    %c0_i32_0 = arith.constant 0 : i32
    %2 = arith.cmpi ne, %1, %c0_i32_0 : i32
    scf.if %2 {
      %cst_13 = arith.constant 0.000000e+00 : f32
      %34 = vector.broadcast %cst_13 : f32 to vector<1x1x128xf32>
      %c0_14 = arith.constant 0 : index
      %c0_15 = arith.constant 0 : index
      %c0_16 = arith.constant 0 : index
      %35 = vector.load %arg3[%c0_14, %c0_15, %c0_16] : memref<1x1x128xf32, #tpu.memory_space<vmem>>, vector<1x1x128xf32>
      tpu.vector_store %arg3[%c0_14, %c0_15, %c0_16], %34 {strides = array<i32>} : memref<1x1x128xf32, #tpu.memory_space<vmem>>, vector<1x1x128xf32>,
    } else {
    }
    %c0 = arith.constant 0 : index
    %c0_1 = arith.constant 0 : index
    %3 = vector.load %arg2[%c0, %c0_1] : memref<16x32xf32, #tpu.memory_space<vmem>>, vector<16x32xf32>
    %cst = arith.constant dense<0xFF800000> : vector<16xf32>
    %4 = vector.multi_reduction <maximumf>, %3, %cst [1] : vector<16x32xf32> to vector<16xf32>
    %5 = vector.shape_cast %4 : vector<16xf32> to vector<16x1xf32>
    %6 = vector.broadcast %5 : vector<16x1xf32> to vector<16x32xf32>
    %7 = arith.subf %3, %6 : vector<16x32xf32>
    %8 = math.exp %7 : vector<16x32xf32>
    %cst_2 = arith.constant dense<0.000000e+00> : vector<16xf32>
    %9 = vector.multi_reduction <add>, %8, %cst_2 [1] : vector<16x32xf32> to vector<16xf32>
    %10 = arith.mulf %8, %7 : vector<16x32xf32>
    %cst_3 = arith.constant dense<0.000000e+00> : vector<16xf32>
    %11 = vector.multi_reduction <add>, %10, %cst_3 [1] : vector<16x32xf32> to vector<16xf32>
    %12 = math.log %9 : vector<16xf32>
    %13 = arith.divf %11, %9 : vector<16xf32>
    %14 = arith.subf %12, %13 : vector<16xf32>
    %c1_i32 = arith.constant 1 : i32
    %15 = arith.muli %arg0, %c1_i32 : i32
    %16 = arith.addi %15, %arg1 : i32
    %c16_i32 = arith.constant 16 : i32
    %17 = arith.muli %16, %c16_i32 : i32
    %18 = tpu.iota {dimensions = array<i32: 1>} : vector<1x16xi32>
    %19 = vector.broadcast %17 : i32 to vector<1x16xi32>
    %20 = arith.addi %19, %18 : vector<1x16xi32>
    %c16_i32_4 = arith.constant 16 : i32
    %21 = vector.broadcast %c16_i32_4 : i32 to vector<1x16xi32>
    %22 = arith.cmpi slt, %20, %21 : vector<1x16xi32>
    %23 = vector.shape_cast %14 : vector<16xf32> to vector<1x16xf32>
    %cst_5 = arith.constant 0.000000e+00 : f32
    %24 = vector.broadcast %cst_5 : f32 to vector<1x16xf32>
    %25 = arith.select %22, %23, %24 : vector<1x16xi1>, vector<1x16xf32>
    %c0_6 = arith.constant 0 : index
    %c0_7 = arith.constant 0 : index
    %c0_8 = arith.constant 0 : index
    %26 = vector.load %arg3[%c0_6, %c0_7, %c0_8] : memref<1x1x128xf32, #tpu.memory_space<vmem>>, vector<1x1x128xf32>
    %27 = vector.shape_cast %25 : vector<1x16xf32> to vector<1x1x16xf32>
    %cst_9 = arith.constant dense<0.000000e+00> : vector<1xf32>
    %28 = vector.multi_reduction <add>, %27, %cst_9 [1, 2] : vector<1x1x16xf32> to vector<1xf32>
    %29 = vector.shape_cast %28 : vector<1xf32> to vector<1x1x1xf32>
    %30 = vector.extract %29[0, 0, 0] : f32 from vector<1x1x1xf32>
    %31 = vector.broadcast %30 : f32 to vector<1x1x128xf32>
    %32 = arith.addf %26, %31 : vector<1x1x128xf32>
    %c0_10 = arith.constant 0 : index
    %c0_11 = arith.constant 0 : index
    %c0_12 = arith.constant 0 : index
    %33 = vector.load %arg3[%c0_10, %c0_11, %c0_12] : memref<1x1x128xf32, #tpu.memory_space<vmem>>, vector<1x1x128xf32>
    tpu.vector_store %arg3[%c0_10, %c0_11, %c0_12], %32 {strides = array<i32>} : memref<1x1x128xf32, #tpu.memory_space<vmem>>, vector<1x1x128xf32>,
    return
  }
  func.func @transform_0(%arg0: i32, %arg1: i32) -> (i32, i32) {
    %c1_i32 = arith.constant 1 : i32
    %0 = arith.muli %arg0, %c1_i32 : i32
    %1 = arith.addi %0, %arg1 : i32
    %c0_i32 = arith.constant 0 : i32
    %c0_i32_0 = arith.constant 0 : i32
    return %1, %c0_i32 : i32, i32
  }
  func.func @transform_1(%arg0: i32, %arg1: i32) -> (i32, i32, i32) {
    %c0_i32 = arith.constant 0 : i32
    %c0_i32_0 = arith.constant 0 : i32
    %c0_i32_1 = arith.constant 0 : i32
    return %arg0, %c0_i32, %c0_i32_0 : i32, i32, i32
  }
}

</mosaic_0001>

<bundles_post_ra>
// kernel: tpu_custom_call.1
= control target key start
LH: loop header
LB: loop body
LE: loop exit
PB: predicated region body
PF: predicated region fallthrough
CT: control target
= control target key end

     0   :  { %6 = vsyncpa [#allocation3], 0  ;;  %s681_s0 = inlined_call_operand.hbm [shape: f32[32,32], index: 0, kind: input, shape index: {}]   ;;  %s682_s1 = inlined_call_operand.hbm [shape: f32[2,1,128], index: 1, kind: output, shape index: {}]  }
   0x1   :  { %8 = vsyncpa [#allocation3 + $0x1], 0 }
   0x2   :  { %9 = vsyncpa [#allocation4], 0 }
   0x3   :  { %11 = vsyncpa [#allocation4 + $0x1], 0  ;;  %s538_s6 = smov 0   ;;  %s540_s7 = smov 0  }
   0x4   :  { %s542_s8 = smov 0   ;;  %s544_s9 = smov 0  }
   0x5   :  { %s546_s10 = smov 0   ;;  %s548_s11 = smov 0  }
   0x6 LB: > { %s320_s12 = sadd.s32 4294967295, %s521_s11   ;;  %s321_s13 = sadd.s32 4294967294, %s521_s11   ;;  %s521_s11 = sphi %s548_s11, %s17_s11   ;;  %s517_s10 = sphi %s546_s10, %s693_s10   ;;  %s513_s9 = sphi %s544_s9, %s692_s9   ;;  %s509_s8 = sphi %s542_s8, %s691_s8   ;;  %s505_s7 = sphi %s540_s7, %s690_s7   ;;  %s501_s6 = sphi %s538_s6, %s689_s6  }
   0x7   : > { %s29_s14 = sadd.s32 1, %s517_s10  ;;  %s38_s15 = sadd.s32 1, %s509_s8 }
   0x8   : > { %p31_p0 = scmp.ge.s32.totalorder %s29_s14, 2  ;;  %p45_p1 = scmp.ne.s32.totalorder %s509_s8, %s505_s7 }
   0x9   : > { %p46_p2 = scmp.eq.s32.totalorder %s521_s11, 0  ;;  %p51_p3 = scmp.ne.s32.totalorder %s505_s7, %s501_s6 }
   0xa   : > { %s695_s14 = smov (%p31_p0, %s29_s14), 0  ;;  %p52_p5 = scmp.eq.s32.totalorder %s320_s12, 0 }
   0xb   : > { %p579_p4 = por %p46_p2, %p45_p1  ;;  %s35_s17 = ssub.s32 %s517_s10, %s695_s14 }
   0xc   : > { %p75_p6 = scmp.eq.s32.totalorder %s320_s12, 1  ;;  %p36_p7 = scmp.eq.s32.totalorder %s35_s17, 0 }
   0xd   : > { %p585_p8 = por %p52_p5, %p51_p3  ;;  %p81_p10 = scmp.eq.s32.totalorder %s321_s13, 1 }
   0xe   : > { %p589_p9 = por %p75_p6, %p45_p1  ;;  %p348_p13 = scmp.lt.s32.totalorder %s521_s11, 2 }
   0xf   : > { %s594_s20 = scalar_select %p36_p7, %s509_s8, %s38_s15  }
  0x10   : > { %p596_p11 = por %p81_p10, %p51_p3  ;;  %s101_s22 = sand.u32 1, %s509_s8  }
  0x11   : > { %s324_s23 = sshll.u32 %s101_s22, 4  ;;  %s333_s24 = sshll.u32 %s517_s10, 8 }
  0x12   : > { %s112_s27 = scalar_lea.hbm %s681_s0, %s333_s24  ;;  %s105_s28 = scalar_lea.vmem [#allocation2], %s324_s23 }
  0x13   : > { %s113_s29 = sshll.u32 %s105_s28, 4  ;;  %p609_p0 = pnand %p348_p13, %p579_p4  ;;  %s114_s29 = int_to_ptr.vmem [resolvable:$true] %s113_s29 }
  0x14   : > { %p327_p1 = scmp.ge.s32.totalorder %s521_s11, 1  ;;  %s102_s2 = scalar_lea.sflag [#allocation3], %s101_s22 }
  0x15   : > { %p415_p2 = pneg %p609_p0  ;;  %s426_s3 = scalar_lea.vmem %s114_s29, 256 }
  0x16   : > { %p427_p3 = scmp.ne.s32.totalorder %s114_s29, %s426_s3  ;;  %s523_s4 = smov [#allocation2]  }
  0x17   : > { %s431_s5 = sshll.u32 %s523_s4, 4  ;;  %s432_s5 = int_to_ptr.vmem [resolvable:$false] %s431_s5 }
  0x18   : > { %p429_p5 = pnand %p427_p3, %p415_p2  ;;  %s433_s12 = scalar_lea.vmem %s432_s5, 512 }
  0x19   : > { %p434_p7 = scmp.lt.s32.totalorder %s114_s29, %s432_s5  ;;  %p435_p10 = scmp.lt.s32.totalorder %s433_s12, %s426_s3 }
  0x1a   : > { %p430_p6 = pneg %p429_p5 }
  0x1b   : > { %p436_p12 = por %p435_p10, %p434_p7 }
  0x1d   : > { %p437_p4 = pnand %p436_p12, %p430_p6 }
  0x1f   : > { %440 = shalt.err (!%p437_p4)
}
  0x20   : > { %s524_s13 = smov 128   ;;  %s525_s15 = smov 8  }
  0x21   : > { %343 = dma.hbm_to_vmem [thread:$0]  (!%p609_p0), %s112_s27, 256, %s114_s29, %s102_s2, %s524_s13, %s524_s13, %s525_s15  }
  0x22   : > { %p121_p13 = scmp.lt.s32.totalorder %s521_s11, 3 }
  0x24   : > { %p122_p2 = pnand %p327_p1, %p121_p13 }
  0x25   : > { %s622_s16 = sand.u32 (!%p122_p2), 1, %s505_s7  }
  0x26   : > { %125 = sbr.rel (%p122_p2) target bundleno = 585 (0x249), region = 24  ;;  %s328_s17 = sshll.u32 (!%p122_p2), %s622_s16, 4 }
  0x27   : > { %s128_s22 = scalar_lea.sflag (!%p122_p2), [#allocation3], %s622_s16  ;;  %s131_s23 = scalar_lea.vmem (!%p122_p2), [#allocation2], %s328_s17 }
  0x2b   : > { %492 = dma.done.wait (%p585_p8), %s128_s22, 256  }
  0x2c   : > { %494 = vsyncadd (%p585_p8), %s128_s22, 4294967040  ;;  %vm158_vm0 = vcmask 261120   ;;  %v156_v0 = vld [vmem:[%s131_s23] sm:$0xff]  ;;  %v157_v1 = vld [vmem:[%s131_s23 + $0x8] sm:$0xff]  ;;  %v197_v20 = vlaneseq  ;;  %s329_s18 = sshll.u32 %s513_s9, 4  ;;  %vm213_vm1 = vcmask 130112  }
  0x2d   : > { %v159_v2 = vsel %vm158_vm0, %v156_v0, -inf  ;;  %v162_v3 = vsel %vm158_vm0, %v157_v1, -inf  ;;  %v199_v29 = vstv %s329_s18  ;;  %vm218_vm3 = vcmask 122880   ;;  %s148_s24 = scalar_lea.vmem [#allocation5], %s622_s16  ;;  %s243_s29 = scalar_lea.hbm %s682_s1, %s329_s18 }
  0x2e   : > { %160 = vmax.xlane.f32.xlu0 %v159_v2  ;;  %v198_v22 = vand.u32 127, %v197_v20  ;;  %v205_v24 = vshrl.u32 %v197_v20, 7  ;;  %v526_v45 = vmov 0.0   ;;  %s245_s25 = sshll.u32 %s148_s24, 4  ;;  %s233_s30 = scalar_lea.sflag [#allocation4], %s622_s16  ;;  %s246_s25 = int_to_ptr.vmem [resolvable:$true] %s245_s25 }
  0x2f   : > { %155 = vst [vmem:[%s148_s24] sm:$0x1] %v526_v45  ;;  %s441_s2 = scalar_lea.vmem %s246_s25, 16  ;;  %s527_s3 = smov [#allocation5]  }
  0x30   : > { %v208_v28 = vadd.s32 4294967288, %v198_v22  ;;  %v206_v32 = vsub.s32 %v198_v22, %v205_v24  ;;  %v200_v38 = vadd.s32 %v199_v29, %v198_v22  ;;  %p442_p8 = scmp.ne.s32.totalorder %s246_s25, %s441_s2  ;;  %s445_s4 = sshll.u32 %s527_s3, 4  ;;  %s446_s4 = int_to_ptr.vmem [resolvable:$false] %s445_s4 }
  0x31   : > { %s447_s5 = scalar_lea.vmem %s446_s4, 32  ;;  %p448_p1 = scmp.lt.s32.totalorder %s246_s25, %s446_s4 }
  0x32   : > { %163 = vmax.xlane.f32.xlu0 %v162_v3  ;;  %v211_v36 = vsub.s32 %v208_v28, %v205_v24  ;;  %vm201_vm2 = vcmp.lt.s32.totalorder %v200_v38, 16  ;;  %p443_p12 = pnand %p442_p8, %p589_p9  ;;  %p449_p3 = scmp.lt.s32.totalorder %s447_s5, %s441_s2 }
  0x34   : > { %p444_p0 = pneg %p443_p12  ;;  %p450_p5 = por %p449_p3, %p448_p1 }
  0x36   : > { %v217_v53 = vld [vmem:[%s148_s24] sm:$0x1]  ;;  %p451_p6 = pnand %p450_p5, %p444_p0 }
  0xb7   : > { %v161_v4 = vpop.xlane.xlu0 %160 }
  0xb8   : > { %v165_v5 = vsub.f32 %v156_v0, %v161_v4 }
  0xba   : > { %v167_v6 = vmul.f32 1.442695, %v165_v5 }
  0xbb   : > { %v164_v7 = vpop.xlane.xlu0 %163 }
  0xbc   : > { %401 = vpow2.f32 %v167_v6  ;;  %v166_v8 = vsub.f32 %v157_v1, %v164_v7 }
  0xbe   : > { %v169_v9 = vmul.f32 1.442695, %v166_v8 }
  0xc0   : > { %403 = vpow2.f32 %v169_v9 }
  0xc9   : > { %v402_v10 = vpop.eup %401 }
  0xca   : > { %v171_v11 = vsel %vm158_vm0, %v402_v10, 0.0  ;;  %v177_v12 = vmul.f32 %v402_v10, %v165_v5 }
  0xcb   : > { %172 = vadd.xlane.f32.xlu1 %v171_v11 }
  0xcc   : > { %v179_v13 = vsel %vm158_vm0, %v177_v12, 0.0 }
  0xcd   : > { %v404_v14 = vpop.eup %403  ;;  %180 = vadd.xlane.f32.xlu0 %v179_v13 }
  0xce   : > { %v174_v15 = vsel %vm158_vm0, %v404_v14, 0.0  ;;  %v178_v16 = vmul.f32 %v404_v14, %v166_v8 }
  0xcf   : > { %175 = vadd.xlane.f32.xlu1 %v174_v15 }
  0xd0   : > { %v182_v17 = vsel %vm158_vm0, %v178_v16, 0.0 }
  0xd3   : > { %183 = vadd.xlane.f32.xlu1 %v182_v17 }
 0x154   : > { %v173_v18 = vpop.xlane.xlu1 %172 }
 0x155   : > { %405 = vlog2.f32 %v173_v18 }
 0x156   : > { %407 = vrcp.f32 %v173_v18  ;;  %v181_v25 = vpop.xlane.xlu0 %180 }
 0x158   : > { %v176_v19 = vpop.xlane.xlu1 %175 }
 0x159   : > { %409 = vlog2.f32 %v176_v19 }
 0x15a   : > { %411 = vrcp.f32 %v176_v19 }
 0x15c   : > { %v184_v34 = vpop.xlane.xlu1 %183 }
 0x162   : > { %v406_v21 = vpop.eup %405 }
 0x163   : > { %v408_v23 = vpop.eup %407  ;;  %v186_v26 = vmul.f32 0.6931472, %v406_v21 }
 0x164   : > { %v190_v27 = vmul.f32 %v408_v23, %v181_v25 }
 0x166   : > { %v410_v30 = vpop.eup %409  ;;  %v193_v35 = vsub.f32 %v186_v26, %v190_v27 }
 0x167   : > { %v412_v31 = vpop.eup %411  ;;  %v188_v33 = vmul.f32 0.6931472, %v410_v30 }
 0x168   : > { %v192_v37 = vmul.f32 %v412_v31, %v184_v34  ;;  %v207_v40 = vrot.slane %v193_v35, %v206_v32 }
 0x16a   : > { %v194_v39 = vsub.f32 %v188_v33, %v192_v37 }
 0x16c   : > { %v212_v41 = vrot.slane %v194_v39, %v211_v36 }
 0x16e   : > { %v214_v42 = vsel %vm213_vm1, %v212_v41, %v207_v40 }
 0x16f   : > { %v216_v43 = vsel %vm201_vm2, %v214_v42, 0.0 }
 0x170   : > { %v219_v44 = vsel %vm218_vm3, %v216_v43, 0.0 }
 0x171   : > { %220 = vadd.xlane.f32.xlu0 %v219_v44 }
 0x1fa   : > { %v221_v46 = vpop.xlane.xlu0 %220 }
 0x1fb   : > { %v222_v47 = vrot.slane %v221_v46, 4 }
 0x1fd   : > { %v223_v48 = vadd.f32 %v222_v47, %v221_v46 }
 0x1ff   : > { %v224_v49 = vrot.slane %v223_v48, 2 }
 0x201   : > { %v225_v50 = vadd.f32 %v224_v49, %v223_v48 }
 0x203   : > { %v226_v51 = vrot.slane %v225_v50, 1 }
 0x205   : > { %v227_v52 = vadd.f32 %v226_v51, %v225_v50 }
 0x207   : > { %334 = vpush %v227_v52 }
 0x238   : > { %s335_s26 = spop %334 }
 0x239   : > { %v229_v54 = vstv %s335_s26 }
 0x23a   : > { %v230_v55 = vadd.f32 %v229_v54, %v217_v53 }
 0x23c   : > { %231 = vst [vmem:[%s148_s24] sm:$0x1] %v230_v55 }
 0x23d   : > { %454 = shalt.err (!%p451_p6)
}
 0x23e   : > { %s455_s9 = scalar_lea.hbm %s243_s29, 16  ;;  %s459_s15 = scalar_lea.hbm %s682_s1, 32 }
 0x23f   : > { %p456_p7 = scmp.ne.s32.totalorder %s243_s29, %s455_s9  ;;  %p460_p13 = scmp.lt.s32.totalorder %s243_s29, %s682_s1 }
 0x240   : > { %p461_p2 = scmp.lt.s32.totalorder %s459_s15, %s455_s9 }
 0x241   : > { %p457_p10 = pnand %p456_p7, %p589_p9 }
 0x242   : > { %p462_p8 = por %p461_p2, %p460_p13 }
 0x243   : > { %p458_p4 = pneg %p457_p10 }
 0x245   : > { %p463_p12 = pnand %p462_p8, %p458_p4 }
 0x247   : > { %466 = shalt.err (!%p463_p12)
}
 0x248   : > { %338 = dma.vmem_to_hbm [thread:$0]  (%p589_p9), %s246_s25, 16, %s243_s29, %s233_s30  }
 0x249 PF: > { %s257_s22 = sand.u32 1, %s501_s6   ;;  %p688_p0 = scmp.ge.s32.totalorder %s521_s11, 2 }
 0x24a   : > { %s258_s23 = scalar_lea.sflag [#allocation4], %s257_s22 }
 0x24b   : > { %p345_p1 = pnand %p688_p0, %p596_p11 }
 0x24d   : > { %p346_p3 = pneg %p345_p1 }
 0x24f   : > { %496 = dma.done.wait (%p346_p3), %s258_s23, 16  }
 0x250   : > { %498 = vsyncadd (%p346_p3), %s258_s23, 4294967280  ;;  %s17_s11 = sadd.s32 1, %s521_s11   ;;  %s689_s6 = smov %s505_s7 }
 0x251   : > { %p14_p5 = scmp.ge.s32.totalorder %s17_s11, 4   ;;  %s690_s7 = smov %s509_s8 }
 0x252   : > { %s691_s8 = smov %s594_s20  ;;  %s692_s9 = smov %s517_s10 }
 0x253   : > { %s693_s10 = smov %s695_s14  ;;  %16 = sbr.rel (!%p14_p5) target bundleno = 6 (0x6), region = 73 }
 0x258   :  { %262 = vsyncpa [#allocation3], 1 }
 0x259   :  { %264 = vsyncpa [#allocation3 + $0x1], 1 }
 0x25a   :  { %265 = vsyncpa [#allocation4], 1 }
 0x25b   :  { %267 = vsyncpa [#allocation4 + $0x1], 1 }

</bundles_post_ra>
